<compile_context>
chip_gen: v5e
topology: v5e:2x2
jax: 0.10.0
libtpu: 0.0.40
codegen_flags: <defaults>
</compile_context>

<pallas_src>
from functools import partial

import jax
import jax.numpy as jnp
from jax import lax
from jax.experimental import pallas as pl
from jax.experimental.pallas import tpu as pltpu


def _gol_kernel(x_ref, out_ref, *, H, W):
    # x_ref  : VMEM (TILE_G*H, P*W) board values (0/1), any numeric dtype
    # out_ref: VMEM (TILE_G*H, P*W) int32 next-step board
    rows, cols = x_ref.shape
    xv = x_ref[...].astype(jnp.float32)

    # Per-board edge masks (mod folded away when the tile is a single board
    # along that axis).  They make pltpu.roll wrap-around and cross-board
    # neighbors contribute zero, exactly like the Conv2d zero padding.
    r = lax.broadcasted_iota(jnp.int32, (rows, cols), 0)
    c = lax.broadcasted_iota(jnp.int32, (rows, cols), 1)
    rm = r if rows == H else r % H
    cm = c if cols == W else c % W
    top = rm == 0
    bot = rm == (H - 1)
    lft = cm == 0
    rgt = cm == (W - 1)

    zeros = jnp.zeros_like(xv)

    # Separable all-ones 3x3 sum (zero center):
    #   rowsum = x[i-1] + x[i] + x[i+1]                       (sublane rolls)
    #   neigh  = rowsum[j-1] + rowsum[j] + rowsum[j+1] - x     (lane rolls)
    up_v = jnp.where(top, zeros, pltpu.roll(xv, shift=1, axis=0))
    dn_v = jnp.where(bot, zeros, pltpu.roll(xv, shift=rows - 1, axis=0))
    rowsum = xv + up_v + dn_v

    lf_v = jnp.where(lft, zeros, pltpu.roll(rowsum, shift=1, axis=1))
    rt_v = jnp.where(rgt, zeros, pltpu.roll(rowsum, shift=cols - 1, axis=1))
    neigh = lf_v + rowsum + rt_v - xv

    # lookup[neigh + 9*alive] == 1  iff  neigh==3, or (alive and neigh==2).
    # (lookup[3] = lookup[11] = lookup[12] = 1, all other entries 0.)
    alive = xv != 0.0
    nxt = (neigh == 3.0) | (alive & (neigh == 2.0))
    out_ref[...] = nxt.astype(jnp.int32)


def _largest_divisor_at_most(n, cap):
    cap = max(1, min(n, cap))
    for d in range(cap, 0, -1):
        if n % d == 0:
            return d
    return 1


def game_of_life(x, size):
    """x: (N, 1, size, size) 0/1 board (any numeric dtype).
    Returns (N, 1, size, size) int32 next-generation board."""
    N = x.shape[0]
    H = W = size

    # Lane packing: P boards side-by-side along the last (lane) axis so the
    # kernel's last dim is lane-dense (up to 512 lanes).  P must divide N.
    P = _largest_divisor_at_most(N, max(1, 512 // W)) if W < 128 else 1
    G = N // P
    PW = P * W

    # Layout plumbing only: (N,1,H,W) -> (G*H, P*W), row = g*H + i,
    # col = p*W + j for board (g, p), cell (i, j).  When P == 1 this is a
    # pure reshape (no copy).
    if P == 1:
        x2d = x.reshape(G * H, W)
    else:
        x2d = x.reshape(G, P, H, W).transpose(0, 2, 1, 3).reshape(G * H, PW)

    # Sublane tiling: ~256K elements (~1 MiB f32) of input per grid step,
    # sublane block dim a multiple of 8 (or the full extent).
    target_rows = max(H, (1 << 18) // max(PW, 1))
    tg = _largest_divisor_at_most(G, max(1, target_rows // H))
    if (tg * H) % 8 != 0 and tg != G:
        tg = G  # (8,128) rule fallback: one whole-array block
    grid = (G // tg,)
    block = (tg * H, PW)

    out2d = pl.pallas_call(
        partial(_gol_kernel, H=H, W=W),
        out_shape=jax.ShapeDtypeStruct((G * H, PW), jnp.int32),
        grid=grid,
        in_specs=[pl.BlockSpec(block, lambda i: (i, 0))],
        out_specs=pl.BlockSpec(block, lambda i: (i, 0)),
        compiler_params=pltpu.CompilerParams(
            dimension_semantics=("parallel",),
            vmem_limit_bytes=32 * 1024 * 1024),
    )(x2d)

    if P == 1:
        return out2d.reshape(N, 1, H, W)
    return (out2d.reshape(G, H, P, W)
                 .transpose(0, 2, 1, 3)
                 .reshape(N, 1, H, W))


def _reference(x, size):
    """Pure-JAX reference mirroring the PyTorch forward (pad + conv + LUT)."""
    N = x.shape[0]
    xf = x.astype(jnp.float32).reshape(N, size, size)
    xp = jnp.pad(xf, ((0, 0), (1, 1), (1, 1)))
    w = jnp.array([[1., 1., 1.], [1., 0., 1.], [1., 1., 1.]], jnp.float32)
    neigh = jnp.zeros_like(xf)
    for dy in range(3):
        for dx in range(3):
            neigh = neigh + w[dy, dx] * xp[:, dy:dy + size, dx:dx + size]
    lookup = jnp.array([0, 0, 0, 1, 0, 0, 0, 0, 0,
                        0, 0, 1, 1, 0, 0, 0, 0, 0], jnp.int32)
    idx = neigh.astype(jnp.int32) + xf.astype(jnp.int32) * 9
    return lookup[idx].reshape(-1, 1, size, size)


if __name__ == "__main__":
    size = 16
    N = 8
    key = jax.random.PRNGKey(0)
    # Random 0/1 board, NCHW like the PyTorch module expects.
    x = jax.random.bernoulli(key, p=0.4, shape=(N, 1, size, size)).astype(jnp.float32)

    out = jax.block_until_ready(game_of_life(x, size))
    ref = _reference(x, size)

    assert out.shape == (N, 1, size, size)
    assert out.dtype == jnp.int32
    assert bool(jnp.all(out == ref))

    print("KERNEL_OK")
</pallas_src>

<mosaic_0001>
module attributes {stable_mosaic.version = 11 : i64} {
  func.func @_gol_kernel(%arg0: i32, %arg1: memref<16x128xf32, #tpu.memory_space<vmem>>, %arg2: memref<16x128xi32, #tpu.memory_space<vmem>>) attributes {dimension_semantics = [#tpu.dimension_semantics<parallel>], iteration_bounds = array<i64: 1>, scalar_prefetch = 0 : i64, scratch_operands = 0 : i64, tpu.core_type = #tpu.core_type<tc>, window_params = [{transform_indices = @transform_0, window_bounds = array<i64: 16, 128>}, {transform_indices = @transform_1, window_bounds = array<i64: 16, 128>}]} {
    %c0 = arith.constant 0 : index
    %c0_0 = arith.constant 0 : index
    %0 = vector.load %arg1[%c0, %c0_0] : memref<16x128xf32, #tpu.memory_space<vmem>>, vector<16x128xf32>
    %1 = tpu.iota {dimensions = array<i32: 0>} : vector<16x128xi32>
    %2 = tpu.iota {dimensions = array<i32: 1>} : vector<16x128xi32>
    %c16_i32 = arith.constant 16 : i32
    %c0_i32 = arith.constant 0 : i32
    %3 = arith.cmpi eq, %c16_i32, %c0_i32 : i32
    %c1_i32 = arith.constant 1 : i32
    %4 = arith.select %3, %c1_i32, %c16_i32 : i32
    %5 = vector.broadcast %4 : i32 to vector<16x128xi32>
    %6 = arith.remsi %2, %5 : vector<16x128xi32>
    %c0_i32_1 = arith.constant 0 : i32
    %7 = vector.broadcast %c0_i32_1 : i32 to vector<16x128xi32>
    %8 = arith.cmpi ne, %6, %7 : vector<16x128xi32>
    %c0_i32_2 = arith.constant 0 : i32
    %9 = vector.broadcast %c0_i32_2 : i32 to vector<16x128xi32>
    %10 = arith.cmpi slt, %6, %9 : vector<16x128xi32>
    %c0_i32_3 = arith.constant 0 : i32
    %11 = arith.cmpi slt, %4, %c0_i32_3 : i32
    %12 = vector.broadcast %11 : i1 to vector<16x128xi1>
    %13 = vector.broadcast %12 : vector<16x128xi1> to vector<16x128xi1>
    %14 = arith.xori %10, %13 : vector<16x128xi1>
    %15 = arith.andi %14, %8 : vector<16x128xi1>
    %16 = vector.broadcast %4 : i32 to vector<16x128xi32>
    %17 = arith.addi %6, %16 : vector<16x128xi32>
    %18 = arith.select %15, %17, %6 : vector<16x128xi1>, vector<16x128xi32>
    %c0_i32_4 = arith.constant 0 : i32
    %19 = vector.broadcast %c0_i32_4 : i32 to vector<16x128xi32>
    %20 = arith.cmpi eq, %1, %19 : vector<16x128xi32>
    %c15_i32 = arith.constant 15 : i32
    %21 = vector.broadcast %c15_i32 : i32 to vector<16x128xi32>
    %22 = arith.cmpi eq, %1, %21 : vector<16x128xi32>
    %c0_i32_5 = arith.constant 0 : i32
    %23 = vector.broadcast %c0_i32_5 : i32 to vector<16x128xi32>
    %24 = arith.cmpi eq, %18, %23 : vector<16x128xi32>
    %c15_i32_6 = arith.constant 15 : i32
    %25 = vector.broadcast %c15_i32_6 : i32 to vector<16x128xi32>
    %26 = arith.cmpi eq, %18, %25 : vector<16x128xi32>
    %cst = arith.constant 0.000000e+00 : f32
    %27 = vector.broadcast %cst : f32 to vector<16x128xf32>
    %c1_i32_7 = arith.constant 1 : i32
    %28 = tpu.dynamic_rotate %0 by %c1_i32_7 dim 0 : vector<16x128xf32>, i32 -> vector<16x128xf32>
    %29 = arith.select %20, %27, %28 : vector<16x128xi1>, vector<16x128xf32>
    %c15_i32_8 = arith.constant 15 : i32
    %30 = tpu.dynamic_rotate %0 by %c15_i32_8 dim 0 : vector<16x128xf32>, i32 -> vector<16x128xf32>
    %31 = arith.select %22, %27, %30 : vector<16x128xi1>, vector<16x128xf32>
    %32 = arith.addf %0, %29 : vector<16x128xf32>
    %33 = arith.addf %32, %31 : vector<16x128xf32>
    %c1_i32_9 = arith.constant 1 : i32
    %34 = tpu.dynamic_rotate %33 by %c1_i32_9 dim 1 : vector<16x128xf32>, i32 -> vector<16x128xf32>
    %35 = arith.select %24, %27, %34 : vector<16x128xi1>, vector<16x128xf32>
    %c127_i32 = arith.constant 127 : i32
    %36 = tpu.dynamic_rotate %33 by %c127_i32 dim 1 : vector<16x128xf32>, i32 -> vector<16x128xf32>
    %37 = arith.select %26, %27, %36 : vector<16x128xi1>, vector<16x128xf32>
    %38 = arith.addf %35, %33 : vector<16x128xf32>
    %39 = arith.addf %38, %37 : vector<16x128xf32>
    %40 = arith.subf %39, %0 : vector<16x128xf32>
    %cst_10 = arith.constant 0.000000e+00 : f32
    %41 = vector.broadcast %cst_10 : f32 to vector<16x128xf32>
    %42 = arith.cmpf one, %0, %41 : vector<16x128xf32>
    %cst_11 = arith.constant 3.000000e+00 : f32
    %43 = vector.broadcast %cst_11 : f32 to vector<16x128xf32>
    %44 = arith.cmpf oeq, %40, %43 : vector<16x128xf32>
    %cst_12 = arith.constant 2.000000e+00 : f32
    %45 = vector.broadcast %cst_12 : f32 to vector<16x128xf32>
    %46 = arith.cmpf oeq, %40, %45 : vector<16x128xf32>
    %47 = arith.andi %42, %46 : vector<16x128xi1>
    %48 = arith.ori %44, %47 : vector<16x128xi1>
    %49 = arith.extui %48 : vector<16x128xi1> to vector<16x128xi32>
    %c0_13 = arith.constant 0 : index
    %c0_14 = arith.constant 0 : index
    %50 = vector.load %arg2[%c0_13, %c0_14] : memref<16x128xi32, #tpu.memory_space<vmem>>, vector<16x128xi32>
    tpu.vector_store %arg2[%c0_13, %c0_14], %49 {strides = array<i32>} : memref<16x128xi32, #tpu.memory_space<vmem>>, vector<16x128xi32>,
    return
  }
  func.func @transform_0(%arg0: i32) -> (i32, i32) {
    %c0_i32 = arith.constant 0 : i32
    %c0_i32_0 = arith.constant 0 : i32
    return %arg0, %c0_i32 : i32, i32
  }
  func.func @transform_1(%arg0: i32) -> (i32, i32) {
    %c0_i32 = arith.constant 0 : i32
    %c0_i32_0 = arith.constant 0 : i32
    return %arg0, %c0_i32 : i32, i32
  }
}

</mosaic_0001>

<bundles_post_ra>
// kernel: tpu_custom_call.1
= control target key start
LH: loop header
LB: loop body
LE: loop exit
PB: predicated region body
PF: predicated region fallthrough
CT: control target
= control target key end

     0   :  { %6 = vsyncpa [#allocation3], 0  ;;  %s223_s0 = inlined_call_operand.hbm [shape: f32[16,128], index: 0, kind: input, shape index: {}]   ;;  %s224_s1 = inlined_call_operand.hbm [shape: s32[16,128], index: 1, kind: output, shape index: {}]  }
   0x1   :  { %7 = vsyncpa [#allocation4], 0  ;;  %s12_s8 = sshll.u32 %s223_s0, 4  ;;  %s178_s9 = smov [#allocation2]   ;;  %s13_s8 = int_to_ptr.hbm [resolvable:$true] %s12_s8 }
   0x2   :  { %s14_s10 = sshll.u32 %s178_s9, 4  ;;  %s179_s11 = smov 128   ;;  %s15_s10 = int_to_ptr.vmem [resolvable:$true] %s14_s10 }
   0x3   :  { %s180_s12 = smov 8  }
   0x4   :  { %20 = dma.hbm_to_vmem [thread:$0]  %s13_s8, 256, %s15_s10, [#allocation3], %s179_s11, %s179_s11, %s180_s12  }
   0x5   :  { %174 = dma.done.wait [#allocation3], 256  }
   0x6   :  { %175 = vsyncadd [#allocation3], 4294967040  ;;  %v27_v0 = vlaneseq  ;;  %v25_v2 = vld [vmem:[#allocation2] sm:$0xff]  ;;  %v26_v3 = vld [vmem:[#allocation2 + $0x8] sm:$0xff]  ;;  %s181_s0 = smov 1   ;;  %s182_s13 = smov 127  }
   0x7   :  { %v50_v4 = vrot.slane %v25_v2, 7  ;;  %v51_v5 = vrot.slane %v26_v3, 7  ;;  %v57_v6 = vrot.slane %v25_v2, 1  ;;  %v58_v7 = vrot.slane %v26_v3, 1  ;;  %s184_s14 = smov [#allocation5]   ;;  %s106_s18 = sshll.u32 %s224_s1, 4  ;;  %s107_s18 = int_to_ptr.hbm [resolvable:$true] %s106_s18 }
   0x8   :  { %v28_v1 = vshrl.u32 %v27_v0, 7  ;;  %v31_v19 = vand.u32 127, %v27_v0  ;;  %vm86_vm6 = vcmp.ne.f32.partialorder %v25_v2, 0.0  ;;  %v183_v35 = vmov 0   ;;  %s104_s15 = sshll.u32 %s184_s14, 4  ;;  %s105_s15 = int_to_ptr.vmem [resolvable:$true] %s104_s15 }
   0x9   :  { %vm87_vm11 = vcmp.ne.f32.partialorder %v26_v3, 0.0 }
   0xa   :  { %vm44_vm0 = vcmp.eq.s32.totalorder %v28_v1, 0  ;;  %vm52_vm1 = vcmp.lt.s32.totalorder %v28_v1, 1  ;;  %vm59_vm2 = vcmp.lt.s32.totalorder %v28_v1, 7  ;;  %v29_v9 = vadd.s32 8, %v28_v1 }
   0xb   :  { %v54_v8 = vsel %vm52_vm1, %v51_v5, %v50_v4  ;;  %v60_v11 = vsel %vm59_vm2, %v57_v6, %v58_v7  ;;  %v53_v13 = vsel %vm52_vm1, %v50_v4, %v51_v5  ;;  %v61_v15 = vsel %vm59_vm2, %v58_v7, %v57_v6 }
   0xc   :  { %v55_v10 = vsel %vm44_vm0, 0.0, %v54_v8  ;;  %vm47_vm3 = vcmp.eq.s32.totalorder %v29_v9, 15  ;;  %v65_v16 = vadd.f32 %v53_v13, %v26_v3  ;;  %v36_v20 = vand.u32 15, %v31_v19 }
   0xd   :  { %v64_v12 = vadd.f32 %v55_v10, %v25_v2  ;;  %v63_v17 = vsel %vm47_vm3, 0.0, %v61_v15 }
   0xe   :  { %v67_v18 = vadd.f32 %v65_v16, %v63_v17  ;;  %vm201_vm4 = vcmp.eq.s32.totalorder %v36_v20, 0  ;;  %vm205_vm5 = vcmp.eq.s32.totalorder %v36_v20, 15 }
   0xf   :  { %v66_v14 = vadd.f32 %v64_v12, %v60_v11 }
  0x11   :  { %68 = vrot.lane.b32.xlu0 %v66_v14, %s181_s0  ;;  %74 = vrot.lane.b32.xlu1 %v66_v14, %s182_s13 }
  0x19   :  { %70 = vrot.lane.b32.xlu0 %v67_v18, %s181_s0  ;;  %76 = vrot.lane.b32.xlu1 %v67_v18, %s182_s13 }
  0x83   :  { %v69_v23 = vpop.permute.xlu0 %68  ;;  %v75_v24 = vpop.permute.xlu1 %74 }
  0x84   :  { %v72_v25 = vsel %vm201_vm4, 0.0, %v69_v23  ;;  %v78_v26 = vsel %vm205_vm5, 0.0, %v75_v24 }
  0x85   :  { %v80_v27 = vadd.f32 %v72_v25, %v66_v14 }
  0x87   :  { %v82_v28 = vadd.f32 %v80_v27, %v78_v26 }
  0x89   :  { %v84_v29 = vsub.f32 %v82_v28, %v25_v2 }
  0x8b   :  { %vm88_vm7 = vcmp.eq.f32.partialorder %v84_v29, 3.0  ;;  %vm90_vm8 = vcmp.eq.f32.partialorder %v84_v29, 2.0  ;;  %v71_v30 = vpop.permute.xlu0 %70  ;;  %v77_v31 = vpop.permute.xlu1 %76 }
  0x8c   :  { %vm92_vm9 = vmand %vm86_vm6, %vm90_vm8  ;;  %v73_v32 = vsel %vm201_vm4, 0.0, %v71_v30  ;;  %v79_v33 = vsel %vm205_vm5, 0.0, %v77_v31 }
  0x8d   :  { %vm94_vm10 = vmor %vm88_vm7, %vm92_vm9  ;;  %v81_v34 = vadd.f32 %v73_v32, %v67_v18 }
  0x8e   :  { %v96_v36 = vsel %vm94_vm10, 1, %v183_v35 }
  0x8f   :  { %v83_v37 = vadd.f32 %v81_v34, %v79_v33  ;;  %98 = vst [vmem:[#allocation5] sm:$0xff] %v96_v36 }
  0x91   :  { %v85_v38 = vsub.f32 %v83_v37, %v26_v3 }
  0x93   :  { %vm89_vm12 = vcmp.eq.f32.partialorder %v85_v38, 3.0  ;;  %vm91_vm13 = vcmp.eq.f32.partialorder %v85_v38, 2.0 }
  0x94   :  { %vm93_vm14 = vmand %vm87_vm11, %vm91_vm13 }
  0x95   :  { %vm95_vm15 = vmor %vm89_vm12, %vm93_vm14 }
  0x96   :  { %v97_v39 = vsel %vm95_vm15, 1, %v183_v35 }
  0x97   :  { %99 = vst [vmem:[#allocation5 + $0x8] sm:$0xff] %v97_v39 }
  0x98   :  { %112 = dma.vmem_to_hbm [thread:$0]  %s105_s15, 256, %s107_s18, [#allocation4], %s179_s11, %s179_s11, %s180_s12  }
  0x99   :  { %176 = dma.done.wait [#allocation4], 256  }
  0x9a   :  { %177 = vsyncadd [#allocation4], 4294967040 }
  0x9b   :  { %117 = vsyncpa [#allocation3], 1 }
  0x9c   :  { %118 = vsyncpa [#allocation4], 1 }

</bundles_post_ra>
